<compile_context>
chip_gen: v6e
topology: v6e:2x2x1
jax: 0.10.0
libtpu: 0.0.40
codegen_flags: <defaults>
</compile_context>

<pallas_src>
import functools
import math

import jax
import jax.numpy as jnp
from jax import lax
from jax.experimental import pallas as pl
from jax.experimental.pallas import tpu as pltpu

LN_EPS = 1e-5


def _ln_gelu(h, gamma, beta):
    # LayerNorm (biased var, eps=1e-5) followed by exact-erf GELU (nn.GELU() default).
    mu = jnp.mean(h, axis=-1, keepdims=True)
    var = jnp.mean((h - mu) * (h - mu), axis=-1, keepdims=True)
    hn = (h - mu) * lax.rsqrt(var + LN_EPS)
    hn = hn * gamma + beta
    # TODO(synk): switch to tanh-approx GELU (rides the idle EUP slot) only if a
    # bundle dump shows the VALU saturating on the erf polynomial AND the parity
    # budget vs nn.GELU() exact allows it.
    return 0.5 * hn * (1.0 + lax.erf(hn * (1.0 / math.sqrt(2.0))))


def _make_fused_kernel(hidden_dims, output_dim, compute_dtype):
    """Ref order:
       drug, cell,
       w0_drug, w0_cell, w_1 .. w_{nh-1}, w_out,
       slab (all b / gamma / beta / b_out rows),
       out_ref
    """
    num_hidden = len(hidden_dims)

    def kernel(drug_ref, cell_ref, *refs):
        out_ref = refs[-1]
        slab = refs[-2][...]          # (3*nh + 1, max_w) f32 — single DMA for all small params
        w_refs = refs[:-2]

        d = drug_ref[...].astype(compute_dtype)
        c = cell_ref[...].astype(compute_dtype)

        h0 = hidden_dims[0]
        # First layer: split-weight matmul replaces the torch.cat entirely.
        h = (jnp.dot(d, w_refs[0][...].astype(compute_dtype),
                     preferred_element_type=jnp.float32)
             + jnp.dot(c, w_refs[1][...].astype(compute_dtype),
                       preferred_element_type=jnp.float32)
             + slab[0:1, :h0])
        x = _ln_gelu(h, slab[1:2, :h0], slab[2:3, :h0])

        wi = 2
        for li in range(1, num_hidden):
            hl = hidden_dims[li]
            w = w_refs[wi][...].astype(compute_dtype)
            wi += 1
            h = (jnp.dot(x.astype(compute_dtype), w,
                         preferred_element_type=jnp.float32)
                 + slab[3 * li:3 * li + 1, :hl])
            x = _ln_gelu(h, slab[3 * li + 1:3 * li + 2, :hl],
                         slab[3 * li + 2:3 * li + 3, :hl])

        # Dropout: identity in eval mode (no-op).
        w_out = w_refs[wi][...].astype(compute_dtype)
        r = 3 * num_hidden
        out_ref[...] = (jnp.dot(x.astype(compute_dtype), w_out,
                                preferred_element_type=jnp.float32)
                        + slab[r:r + 1, :output_dim]).astype(out_ref.dtype)

    return kernel


def _full_spec(shape):
    # Full-extent (VMEM-resident) block; rank bound via default arg (avoids the
    # late-binding-closure bug).
    nd = len(shape)
    return pl.BlockSpec(shape, lambda i, nd=nd: (0,) * nd)


def _pick_row_tile(B):
    # <=128: one grid step (whole batch).  >128: guarantee >=2 grid steps so both
    # v7x TensorCores get work; grow the tile to 256/512 for large batches on
    # v6e/v7x to amortize the ~0.35 us per-grid-step overhead.
    if B <= 128:
        return B
    if B < 512:
        return 128
    if B < 1024:
        return 256
    return 512


def _fused_forward_call(drug, cell, weights, slab, hidden_dims, output_dim, bm,
                        compute_dtype):
    Bp, dd = drug.shape
    _, cd = cell.shape
    kernel = _make_fused_kernel(hidden_dims, output_dim, compute_dtype)
    in_specs = [pl.BlockSpec((bm, dd), lambda i: (i, 0)),
                pl.BlockSpec((bm, cd), lambda i: (i, 0))]
    in_specs += [_full_spec(w.shape) for w in weights]
    in_specs += [_full_spec(slab.shape)]
    return pl.pallas_call(
        kernel,
        out_shape=jax.ShapeDtypeStruct((Bp, output_dim), jnp.float32),
        grid=(Bp // bm,),
        in_specs=in_specs,
        # Unpadded (bm, output_dim) block: full-extent last dim is legal and cuts
        # output HBM writes 4x vs padding to 128 lanes (matters on v5e).
        out_specs=pl.BlockSpec((bm, output_dim), lambda i: (i, 0)),
        compiler_params=pltpu.CompilerParams(dimension_semantics=("parallel",)),
        # TODO(synk): if hidden dims scale so that weights exceed a few MiB, set
        # vmem_limit_bytes here, verify via pl.lower_as_mlir that the constant-index
        # weight blocks are not double-buffered (pin with pipeline_mode=pl.Buffered(1)
        # if they are), and budget weights + 2x(row tiles) against v7x's 64 MiB
        # physical / 32 MiB scoped-default VMEM.  Also flip compute_dtype to bf16
        # there (MXU-native on v6e/v7x) — not worth it at 64-wide hidden and it
        # relaxes the 1e-4 parity.
    )(drug, cell, *weights, slab)


@functools.partial(jax.jit,
                   static_argnames=("hidden_dims", "output_dim", "compute_dtype"))
def compound_decoder_forward(drug_emb, cell_onehot, weights, slab, *,
                             hidden_dims, output_dim, compute_dtype=jnp.float32):
    B = drug_emb.shape[0]
    bm = _pick_row_tile(B)
    pad_rows = (-B) % bm
    if pad_rows:
        # Padded (all-zero) rows just pass through LayerNorm of the bias vector —
        # benign, they are sliced away below.
        drug_emb = jnp.pad(drug_emb, ((0, pad_rows), (0, 0)))
        cell_onehot = jnp.pad(cell_onehot, ((0, pad_rows), (0, 0)))
    out = _fused_forward_call(drug_emb, cell_onehot, weights, slab,
                              hidden_dims, output_dim, bm, compute_dtype)
    return out[:B]


# ---------------------------------------------------------------------------
# Parameter construction (torch-shaped) + packing for the fused kernel.
# ---------------------------------------------------------------------------

def init_params(key, drug_emb_dim, cell_onehot_dim, hidden_dims, output_dim):
    """Deterministic synthetic parameters matching nn.Linear / nn.LayerNorm shapes."""
    params = {"hidden": [], "out": None}
    in_features = drug_emb_dim + cell_onehot_dim
    for h in hidden_dims:
        key, kw, kb = jax.random.split(key, 3)
        bound = 1.0 / math.sqrt(in_features)
        w = jax.random.uniform(kw, (in_features, h), jnp.float32, -bound, bound)
        b = jax.random.uniform(kb, (1, h), jnp.float32, -bound, bound)
        gamma = jnp.ones((1, h), jnp.float32)
        beta = jnp.zeros((1, h), jnp.float32)
        params["hidden"].append((w, b, gamma, beta))
        in_features = h
    key, kw, kb = jax.random.split(key, 3)
    bound = 1.0 / math.sqrt(in_features)
    w = jax.random.uniform(kw, (in_features, output_dim), jnp.float32, -bound, bound)
    b = jax.random.uniform(kb, (1, output_dim), jnp.float32, -bound, bound)
    params["out"] = (w, b)
    return params


def pack_params(params, drug_emb_dim):
    """Split the first-layer weight (concat elimination) and pack ALL small params
    (b, gamma, beta per layer + b_out) into one slab so the kernel gets a single DMA
    for them.  Done once, host-side."""
    hidden = params["hidden"]
    assert len(hidden) >= 1, "expects at least one hidden layer"

    w0, _, _, _ = hidden[0]
    weights = [w0[:drug_emb_dim, :], w0[drug_emb_dim:, :]]
    for (w, _, _, _) in hidden[1:]:
        weights.append(w)
    w_out, b_out = params["out"]
    weights.append(w_out)

    out_dim = w_out.shape[1]
    max_w = max([w.shape[1] for (w, _, _, _) in hidden] + [out_dim])

    def row(v):
        v = v.reshape(1, -1)
        pad = max_w - v.shape[1]
        return jnp.pad(v, ((0, 0), (0, pad))) if pad else v

    rows = []
    for (_, b, g, be) in hidden:
        rows += [row(b), row(g), row(be)]
    rows.append(row(b_out))
    slab = jnp.concatenate(rows, axis=0).astype(jnp.float32)
    return tuple(weights), slab


# ---------------------------------------------------------------------------
# Pure-JAX reference (torch-shaped params) for correctness checking.
# ---------------------------------------------------------------------------

def _reference_forward(drug_emb, cell_onehot, params):
    x = jnp.concatenate([drug_emb, cell_onehot], axis=-1)
    for (w, b, gamma, beta) in params["hidden"]:
        h = x @ w + b
        mu = jnp.mean(h, axis=-1, keepdims=True)
        var = jnp.mean((h - mu) ** 2, axis=-1, keepdims=True)
        hn = (h - mu) / jnp.sqrt(var + LN_EPS) * gamma + beta
        x = 0.5 * hn * (1.0 + lax.erf(hn / math.sqrt(2.0)))
    w_out, b_out = params["out"]
    return x @ w_out + b_out


if __name__ == "__main__":
    # small, module-consistent config
    batch = 16
    drug_emb_dim = 16
    cell_onehot_dim = 16
    hidden_dims = (64, 64)
    output_dim = 32

    key = jax.random.PRNGKey(0)
    key, k1, k2, kp = jax.random.split(key, 4)
    drug_emb = jax.random.normal(k1, (batch, drug_emb_dim), jnp.float32)
    cell_onehot = (jax.random.uniform(k2, (batch, cell_onehot_dim)) > 0.5).astype(jnp.float32)

    params = init_params(kp, drug_emb_dim, cell_onehot_dim, hidden_dims, output_dim)
    weights, slab = pack_params(params, drug_emb_dim)

    out = compound_decoder_forward(drug_emb, cell_onehot, weights, slab,
                                   hidden_dims=hidden_dims, output_dim=output_dim)
    out = jax.block_until_ready(out)

    ref = _reference_forward(drug_emb, cell_onehot, params)
    assert out.shape == (batch, output_dim)
    assert jnp.allclose(out, ref, atol=1e-4, rtol=1e-4)

    print("KERNEL_OK")
</pallas_src>

<mosaic_0001>
module attributes {stable_mosaic.version = 11 : i64} {
  func.func @kernel(%arg0: i32, %arg1: memref<16x16xf32, #tpu.memory_space<vmem>>, %arg2: memref<16x16xf32, #tpu.memory_space<vmem>>, %arg3: memref<16x64xf32, #tpu.memory_space<vmem>>, %arg4: memref<16x64xf32, #tpu.memory_space<vmem>>, %arg5: memref<64x64xf32, #tpu.memory_space<vmem>>, %arg6: memref<64x32xf32, #tpu.memory_space<vmem>>, %arg7: memref<7x64xf32, #tpu.memory_space<vmem>>, %arg8: memref<16x32xf32, #tpu.memory_space<vmem>>) attributes {dimension_semantics = [#tpu.dimension_semantics<parallel>], iteration_bounds = array<i64: 1>, scalar_prefetch = 0 : i64, scratch_operands = 0 : i64, tpu.core_type = #tpu.core_type<tc>, window_params = [{transform_indices = @transform_0, window_bounds = array<i64: 16, 16>}, {transform_indices = @transform_1, window_bounds = array<i64: 16, 16>}, {pipeline_mode = #tpu.pipeline_mode<synchronous>, transform_indices = @transform_2, window_bounds = array<i64: 16, 64>}, {pipeline_mode = #tpu.pipeline_mode<synchronous>, transform_indices = @transform_3, window_bounds = array<i64: 16, 64>}, {pipeline_mode = #tpu.pipeline_mode<synchronous>, transform_indices = @transform_4, window_bounds = array<i64: 64, 64>}, {pipeline_mode = #tpu.pipeline_mode<synchronous>, transform_indices = @transform_5, window_bounds = array<i64: 64, 32>}, {pipeline_mode = #tpu.pipeline_mode<synchronous>, transform_indices = @transform_6, window_bounds = array<i64: 7, 64>}, {transform_indices = @transform_7, window_bounds = array<i64: 16, 32>}]} {
    %c0 = arith.constant 0 : index
    %c0_0 = arith.constant 0 : index
    %0 = vector.load %arg7[%c0, %c0_0] : memref<7x64xf32, #tpu.memory_space<vmem>>, vector<7x64xf32>
    %c0_1 = arith.constant 0 : index
    %c0_2 = arith.constant 0 : index
    %1 = vector.load %arg1[%c0_1, %c0_2] : memref<16x16xf32, #tpu.memory_space<vmem>>, vector<16x16xf32>
    %c0_3 = arith.constant 0 : index
    %c0_4 = arith.constant 0 : index
    %2 = vector.load %arg2[%c0_3, %c0_4] : memref<16x16xf32, #tpu.memory_space<vmem>>, vector<16x16xf32>
    %c0_5 = arith.constant 0 : index
    %c0_6 = arith.constant 0 : index
    %3 = vector.load %arg3[%c0_5, %c0_6] : memref<16x64xf32, #tpu.memory_space<vmem>>, vector<16x64xf32>
    %cst = arith.constant dense<0.000000e+00> : vector<16x64xf32>
    %4 = tpu.matmul %1, %3, %cst {dimension_numbers = #tpu.dot_dimension_numbers<[1], [0], [0], [1], [0, 0, 1, 1], [], []>} : vector<16x16xf32>, vector<16x64xf32>, vector<16x64xf32> -> vector<16x64xf32>
    %c0_7 = arith.constant 0 : index
    %c0_8 = arith.constant 0 : index
    %5 = vector.load %arg4[%c0_7, %c0_8] : memref<16x64xf32, #tpu.memory_space<vmem>>, vector<16x64xf32>
    %cst_9 = arith.constant dense<0.000000e+00> : vector<16x64xf32>
    %6 = tpu.matmul %2, %5, %cst_9 {dimension_numbers = #tpu.dot_dimension_numbers<[1], [0], [0], [1], [0, 0, 1, 1], [], []>} : vector<16x16xf32>, vector<16x64xf32>, vector<16x64xf32> -> vector<16x64xf32>
    %7 = arith.addf %4, %6 : vector<16x64xf32>
    %8 = vector.extract_strided_slice %0 {offsets = [0, 0], sizes = [1, 64], strides = [1, 1]} : vector<7x64xf32> to vector<1x64xf32>
    %9 = vector.broadcast %8 : vector<1x64xf32> to vector<16x64xf32>
    %10 = arith.addf %7, %9 : vector<16x64xf32>
    %11 = vector.extract_strided_slice %0 {offsets = [1, 0], sizes = [1, 64], strides = [1, 1]} : vector<7x64xf32> to vector<1x64xf32>
    %12 = vector.extract_strided_slice %0 {offsets = [2, 0], sizes = [1, 64], strides = [1, 1]} : vector<7x64xf32> to vector<1x64xf32>
    %cst_10 = arith.constant dense<0.000000e+00> : vector<16xf32>
    %13 = vector.multi_reduction <add>, %10, %cst_10 [1] : vector<16x64xf32> to vector<16xf32>
    %14 = vector.shape_cast %13 : vector<16xf32> to vector<16x1xf32>
    %cst_11 = arith.constant 6.400000e+01 : f32
    %15 = vector.broadcast %cst_11 : f32 to vector<16x1xf32>
    %16 = arith.divf %14, %15 : vector<16x1xf32>
    %17 = vector.broadcast %16 : vector<16x1xf32> to vector<16x64xf32>
    %18 = arith.subf %10, %17 : vector<16x64xf32>
    %19 = vector.broadcast %16 : vector<16x1xf32> to vector<16x64xf32>
    %20 = arith.subf %10, %19 : vector<16x64xf32>
    %21 = arith.mulf %18, %20 : vector<16x64xf32>
    %cst_12 = arith.constant dense<0.000000e+00> : vector<16xf32>
    %22 = vector.multi_reduction <add>, %21, %cst_12 [1] : vector<16x64xf32> to vector<16xf32>
    %23 = vector.shape_cast %22 : vector<16xf32> to vector<16x1xf32>
    %cst_13 = arith.constant 6.400000e+01 : f32
    %24 = vector.broadcast %cst_13 : f32 to vector<16x1xf32>
    %25 = arith.divf %23, %24 : vector<16x1xf32>
    %26 = vector.broadcast %16 : vector<16x1xf32> to vector<16x64xf32>
    %27 = arith.subf %10, %26 : vector<16x64xf32>
    %cst_14 = arith.constant 9.99999974E-6 : f32
    %28 = vector.broadcast %cst_14 : f32 to vector<16x1xf32>
    %29 = arith.addf %25, %28 : vector<16x1xf32>
    %30 = math.rsqrt %29 : vector<16x1xf32>
    %31 = vector.broadcast %30 : vector<16x1xf32> to vector<16x64xf32>
    %32 = arith.mulf %27, %31 : vector<16x64xf32>
    %33 = vector.broadcast %11 : vector<1x64xf32> to vector<16x64xf32>
    %34 = arith.mulf %32, %33 : vector<16x64xf32>
    %35 = vector.broadcast %12 : vector<1x64xf32> to vector<16x64xf32>
    %36 = arith.addf %34, %35 : vector<16x64xf32>
    %cst_15 = arith.constant 5.000000e-01 : f32
    %37 = vector.broadcast %cst_15 : f32 to vector<16x64xf32>
    %38 = arith.mulf %37, %36 : vector<16x64xf32>
    %cst_16 = arith.constant 0.707106769 : f32
    %39 = vector.broadcast %cst_16 : f32 to vector<16x64xf32>
    %40 = arith.mulf %36, %39 : vector<16x64xf32>
    %41 = math.erf %40 : vector<16x64xf32>
    %cst_17 = arith.constant 1.000000e+00 : f32
    %42 = vector.broadcast %cst_17 : f32 to vector<16x64xf32>
    %43 = arith.addf %42, %41 : vector<16x64xf32>
    %44 = arith.mulf %38, %43 : vector<16x64xf32>
    %c0_18 = arith.constant 0 : index
    %c0_19 = arith.constant 0 : index
    %45 = vector.load %arg5[%c0_18, %c0_19] : memref<64x64xf32, #tpu.memory_space<vmem>>, vector<64x64xf32>
    %cst_20 = arith.constant dense<0.000000e+00> : vector<16x64xf32>
    %46 = tpu.matmul %44, %45, %cst_20 {dimension_numbers = #tpu.dot_dimension_numbers<[1], [0], [0], [1], [0, 0, 1, 1], [], []>} : vector<16x64xf32>, vector<64x64xf32>, vector<16x64xf32> -> vector<16x64xf32>
    %47 = vector.extract_strided_slice %0 {offsets = [3, 0], sizes = [1, 64], strides = [1, 1]} : vector<7x64xf32> to vector<1x64xf32>
    %48 = vector.broadcast %47 : vector<1x64xf32> to vector<16x64xf32>
    %49 = arith.addf %46, %48 : vector<16x64xf32>
    %50 = vector.extract_strided_slice %0 {offsets = [4, 0], sizes = [1, 64], strides = [1, 1]} : vector<7x64xf32> to vector<1x64xf32>
    %51 = vector.extract_strided_slice %0 {offsets = [5, 0], sizes = [1, 64], strides = [1, 1]} : vector<7x64xf32> to vector<1x64xf32>
    %cst_21 = arith.constant dense<0.000000e+00> : vector<16xf32>
    %52 = vector.multi_reduction <add>, %49, %cst_21 [1] : vector<16x64xf32> to vector<16xf32>
    %53 = vector.shape_cast %52 : vector<16xf32> to vector<16x1xf32>
    %cst_22 = arith.constant 6.400000e+01 : f32
    %54 = vector.broadcast %cst_22 : f32 to vector<16x1xf32>
    %55 = arith.divf %53, %54 : vector<16x1xf32>
    %56 = vector.broadcast %55 : vector<16x1xf32> to vector<16x64xf32>
    %57 = arith.subf %49, %56 : vector<16x64xf32>
    %58 = vector.broadcast %55 : vector<16x1xf32> to vector<16x64xf32>
    %59 = arith.subf %49, %58 : vector<16x64xf32>
    %60 = arith.mulf %57, %59 : vector<16x64xf32>
    %cst_23 = arith.constant dense<0.000000e+00> : vector<16xf32>
    %61 = vector.multi_reduction <add>, %60, %cst_23 [1] : vector<16x64xf32> to vector<16xf32>
    %62 = vector.shape_cast %61 : vector<16xf32> to vector<16x1xf32>
    %cst_24 = arith.constant 6.400000e+01 : f32
    %63 = vector.broadcast %cst_24 : f32 to vector<16x1xf32>
    %64 = arith.divf %62, %63 : vector<16x1xf32>
    %65 = vector.broadcast %55 : vector<16x1xf32> to vector<16x64xf32>
    %66 = arith.subf %49, %65 : vector<16x64xf32>
    %cst_25 = arith.constant 9.99999974E-6 : f32
    %67 = vector.broadcast %cst_25 : f32 to vector<16x1xf32>
    %68 = arith.addf %64, %67 : vector<16x1xf32>
    %69 = math.rsqrt %68 : vector<16x1xf32>
    %70 = vector.broadcast %69 : vector<16x1xf32> to vector<16x64xf32>
    %71 = arith.mulf %66, %70 : vector<16x64xf32>
    %72 = vector.broadcast %50 : vector<1x64xf32> to vector<16x64xf32>
    %73 = arith.mulf %71, %72 : vector<16x64xf32>
    %74 = vector.broadcast %51 : vector<1x64xf32> to vector<16x64xf32>
    %75 = arith.addf %73, %74 : vector<16x64xf32>
    %cst_26 = arith.constant 5.000000e-01 : f32
    %76 = vector.broadcast %cst_26 : f32 to vector<16x64xf32>
    %77 = arith.mulf %76, %75 : vector<16x64xf32>
    %cst_27 = arith.constant 0.707106769 : f32
    %78 = vector.broadcast %cst_27 : f32 to vector<16x64xf32>
    %79 = arith.mulf %75, %78 : vector<16x64xf32>
    %80 = math.erf %79 : vector<16x64xf32>
    %cst_28 = arith.constant 1.000000e+00 : f32
    %81 = vector.broadcast %cst_28 : f32 to vector<16x64xf32>
    %82 = arith.addf %81, %80 : vector<16x64xf32>
    %83 = arith.mulf %77, %82 : vector<16x64xf32>
    %c0_29 = arith.constant 0 : index
    %c0_30 = arith.constant 0 : index
    %84 = vector.load %arg6[%c0_29, %c0_30] : memref<64x32xf32, #tpu.memory_space<vmem>>, vector<64x32xf32>
    %cst_31 = arith.constant dense<0.000000e+00> : vector<16x32xf32>
    %85 = tpu.matmul %83, %84, %cst_31 {dimension_numbers = #tpu.dot_dimension_numbers<[1], [0], [0], [1], [0, 0, 1, 1], [], []>} : vector<16x64xf32>, vector<64x32xf32>, vector<16x32xf32> -> vector<16x32xf32>
    %86 = vector.extract_strided_slice %0 {offsets = [6, 0], sizes = [1, 32], strides = [1, 1]} : vector<7x64xf32> to vector<1x32xf32>
    %87 = vector.broadcast %86 : vector<1x32xf32> to vector<16x32xf32>
    %88 = arith.addf %85, %87 : vector<16x32xf32>
    %c0_32 = arith.constant 0 : index
    %c0_33 = arith.constant 0 : index
    %89 = vector.load %arg8[%c0_32, %c0_33] : memref<16x32xf32, #tpu.memory_space<vmem>>, vector<16x32xf32>
    tpu.vector_store %arg8[%c0_32, %c0_33], %88 {strides = array<i32>} : memref<16x32xf32, #tpu.memory_space<vmem>>, vector<16x32xf32>,
    return
  }
  func.func @transform_0(%arg0: i32) -> (i32, i32) {
    %c0_i32 = arith.constant 0 : i32
    %c0_i32_0 = arith.constant 0 : i32
    return %arg0, %c0_i32 : i32, i32
  }
  func.func @transform_1(%arg0: i32) -> (i32, i32) {
    %c0_i32 = arith.constant 0 : i32
    %c0_i32_0 = arith.constant 0 : i32
    return %arg0, %c0_i32 : i32, i32
  }
  func.func @transform_2(%arg0: i32) -> (i32, i32) {
    %c0_i32 = arith.constant 0 : i32
    %c0_i32_0 = arith.constant 0 : i32
    %c0_i32_1 = arith.constant 0 : i32
    return %c0_i32, %c0_i32_0 : i32, i32
  }
  func.func @transform_3(%arg0: i32) -> (i32, i32) {
    %c0_i32 = arith.constant 0 : i32
    %c0_i32_0 = arith.constant 0 : i32
    %c0_i32_1 = arith.constant 0 : i32
    return %c0_i32, %c0_i32_0 : i32, i32
  }
  func.func @transform_4(%arg0: i32) -> (i32, i32) {
    %c0_i32 = arith.constant 0 : i32
    %c0_i32_0 = arith.constant 0 : i32
    %c0_i32_1 = arith.constant 0 : i32
    return %c0_i32, %c0_i32_0 : i32, i32
  }
  func.func @transform_5(%arg0: i32) -> (i32, i32) {
    %c0_i32 = arith.constant 0 : i32
    %c0_i32_0 = arith.constant 0 : i32
    %c0_i32_1 = arith.constant 0 : i32
    return %c0_i32, %c0_i32_0 : i32, i32
  }
  func.func @transform_6(%arg0: i32) -> (i32, i32) {
    %c0_i32 = arith.constant 0 : i32
    %c0_i32_0 = arith.constant 0 : i32
    %c0_i32_1 = arith.constant 0 : i32
    return %c0_i32, %c0_i32_0 : i32, i32
  }
  func.func @transform_7(%arg0: i32) -> (i32, i32) {
    %c0_i32 = arith.constant 0 : i32
    %c0_i32_0 = arith.constant 0 : i32
    return %arg0, %c0_i32 : i32, i32
  }
}

</mosaic_0001>

<bundles_post_ra>
// kernel: compound_decoder_forward.1
= control target key start
LH: loop header
LB: loop body
LE: loop exit
PB: predicated region body
PF: predicated region fallthrough
CT: control target
= control target key end

     0   :  { %12 = vsyncpa [#allocation3], 0  ;;  %s869_s0 = inlined_call_operand.vmem [shape: f32[16,16], index: 0, kind: input, shape index: {}]   ;;  %s870_s1 = inlined_call_operand.vmem [shape: f32[16,16], index: 1, kind: input, shape index: {}]   ;;  %s871_s2 = inlined_call_operand.hbm [shape: f32[16,64], index: 2, kind: input, shape index: {}]   ;;  %s872_s3 = inlined_call_operand.hbm [shape: f32[16,64], index: 3, kind: input, shape index: {}]   ;;  %s873_s4 = inlined_call_operand.vmem [shape: f32[64,64], index: 4, kind: input, shape index: {}]   ;;  %s874_s5 = inlined_call_operand.vmem [shape: f32[64,32], index: 5, kind: input, shape index: {}]   ;;  %s875_s6 = inlined_call_operand.vmem [shape: f32[7,64], index: 6, kind: input, shape index: {}]   ;;  %s876_s7 = inlined_call_operand.hbm [shape: f32[16,32], index: 7, kind: output, shape index: {}]  }
   0x1   :  { %13 = vsyncpa [#allocation6], 0 }
   0x2   :  { %14 = vsyncpa [#allocation4], 0  ;;  %s713_s24 = smov [#allocation2]  }
   0x3   :  { %s24_s25 = sshll.u32 %s713_s24, 4  ;;  %s25_s25 = int_to_ptr.vmem [resolvable:$true] %s24_s25 }
   0x4   :  { %s655_s26 = scalar_lea.vmem %s25_s25, 256  ;;  %p660_p1 = scmp.lt.s32.totalorder %s25_s25, %s25_s25 }
   0x5   :  { %p656_p0 = scmp.ne.s32.totalorder %s25_s25, %s655_s26  ;;  %p661_p2 = scmp.lt.s32.totalorder %s655_s26, %s655_s26 }
   0x7   :  { %p662_p3 = por %p661_p2, %p660_p1 }
   0x9   :  { %p663_p4 = pnand %p662_p3, %p656_p0 }
   0xb   :  { %666 = shalt.err (!%p663_p4)
}
   0xc   :  { %s714_s27 = smov 128   ;;  %s715_s28 = smov 8  }
   0xd   :  { %30 = dma.hbm_to_vmem [thread:$0]  %s871_s2, 256, %s25_s25, [#allocation3], %s714_s27, %s714_s27, %s715_s28  }
   0xe   :  { %s716_s8 = smov [#allocation5]  }
   0xf   :  { %s36_s9 = sshll.u32 %s716_s8, 4  ;;  %s37_s9 = int_to_ptr.vmem [resolvable:$true] %s36_s9 }
  0x10   :  { %s675_s10 = scalar_lea.vmem %s37_s9, 256  ;;  %p680_p6 = scmp.lt.s32.totalorder %s37_s9, %s37_s9 }
  0x11   :  { %p676_p5 = scmp.ne.s32.totalorder %s37_s9, %s675_s10  ;;  %p681_p7 = scmp.lt.s32.totalorder %s675_s10, %s675_s10 }
  0x13   :  { %p682_p8 = por %p681_p7, %p680_p6 }
  0x15   :  { %p683_p9 = pnand %p682_p8, %p676_p5 }
  0x17   :  { %686 = shalt.err (!%p683_p9)
}
  0x18   :  { %42 = dma.hbm_to_vmem [thread:$0]  %s872_s3, 256, %s37_s9, [#allocation6], %s714_s27, %s714_s27, %s715_s28  }
  0x19   :  { %707 = dma.done.wait [#allocation3], 256  }
  0x1a   :  { %708 = vsyncadd [#allocation3], 4294967040 }
  0x1b   :  { %709 = dma.done.wait [#allocation6], 256  }
  0x1c   :  { %710 = vsyncadd [#allocation6], 4294967040  ;;  %v63_v0 = vld [vmem:[#allocation5 + $0x8] sm:$0xff]  ;;  %v61_v1 = vld [vmem:[#allocation2 + $0x8] sm:$0xff]  ;;  %vm64_vm0 = vcmask 130048   ;;  %v227_v8 = vlaneseq  ;;  %vm233_vm1 = vcmask 523264  }
  0x1d   :  { %v62_v2 = vld [vmem:[#allocation5] sm:$0xff]  ;;  %574 = vmatprep.subr.mxu0 %v63_v0  ;;  %581 = vmatprep.subr.mxu1 %v61_v1  ;;  %v60_v3 = vld [vmem:[#allocation2] sm:$0xff]  ;;  %v59_v6 = vld [vmem:[%s870_s1 + $0x8] sm:$0xff]  ;;  %vm517_vm2 = vcmask 261120  }
  0x1e   :  { %v58_v4 = vld [vmem:[%s870_s1] sm:$0xff]  ;;  %575 = vmatpush3.msra.mxu0 %v63_v0  ;;  %582 = vmatpush3.msra.mxu1 %v61_v1  ;;  %v57_v7 = vld [vmem:[%s869_s0 + $0x8] sm:$0xff]  ;;  %v782_v9 = vshrl.u32 %v227_v8, 7  ;;  %v290_v33 = vld [vmem:[%s873_s4 + $0x38] sm:$0xff] }
  0x1f   :  { %v56_v5 = vld [vmem:[%s869_s0] sm:$0xff]  ;;  %576 = vmatprep.subr.mxu0 %v62_v2  ;;  %583 = vmatprep.subr.mxu1 %v60_v3  ;;  %v289_v34 = vld [vmem:[%s873_s4 + $0x30] sm:$0xff]  ;;  %v288_v35 = vld [vmem:[%s873_s4 + $0x28] sm:$0xff] }
  0x20   :  { %577 = vmatpush3.msra.mxu0 %v62_v2  ;;  %578 = vmatprep.mubr.msk.f32.mxu0 %vm64_vm0, %v58_v4  ;;  %v229_v10 = vsub.s32 0, %v782_v9  ;;  %v788_v13 = vld [vmem:[%s875_s6] sm:$0x7f]  ;;  %v286_v37 = vld [vmem:[%s873_s4 + $0x18] sm:$0xff]  ;;  %v285_v38 = vld [vmem:[%s873_s4 + $0x10] sm:$0xff]  ;;  %v263_v47 = vsub.s32 1, %v782_v9 }
  0x21   :  { %584 = vmatpush3.msra.mxu1 %v60_v3  ;;  %585 = vmatprep.mubr.msk.f32.mxu1 %vm64_vm0, %v56_v5  ;;  %v287_v36 = vld [vmem:[%s873_s4 + $0x20] sm:$0xff]  ;;  %v284_v39 = vld [vmem:[%s873_s4 + $0x8] sm:$0xff]  ;;  %v269_v48 = vsub.s32 2, %v782_v9  ;;  %v293_v5 = vsub.s32 3, %v782_v9 }
  0x22   :  { %579 = vmatmul.mubr.msk.f32.vlgmr.msra.gmra.mxu0 %vm64_vm0, %v59_v6  ;;  %586 = vmatmul.mubr.msk.f32.vlgmr.msra.gmra.mxu1 %vm64_vm0, %v57_v7  ;;  %v230_v18 = vrot.slane %v788_v13, %v229_v10  ;;  %v283_v40 = vld [vmem:[%s873_s4] sm:$0xff]  ;;  %v264_v49 = vrot.slane %v788_v13, %v263_v47 }
  0x23   :  { %588 = vmatprep.subr.mxu0 %v290_v33  ;;  %v270_v52 = vrot.slane %v788_v13, %v269_v48  ;;  %v294_v6 = vrot.slane %v788_v13, %v293_v5 }
  0x24   :  { %589 = vmatpush3.msra.mxu0 %v290_v33 }
  0x25   :  { %590 = vmatprep.subr.mxu0 %v289_v34 }
  0x26   :  { %591 = vmatpush3.msra.mxu0 %v289_v34 }
  0x27   :  { %592 = vmatprep.subr.mxu0 %v288_v35 }
  0x28   :  { %593 = vmatpush3.msra.mxu0 %v288_v35 }
  0x29   :  { %594 = vmatprep.subr.mxu0 %v287_v36 }
  0x2a   :  { %595 = vmatpush3.msra.mxu0 %v287_v36 }
  0x2b   :  { %596 = vmatprep.subr.mxu0 %v286_v37 }
  0x2c   :  { %597 = vmatpush3.msra.mxu0 %v286_v37 }
  0x2d   :  { %598 = vmatprep.subr.mxu0 %v285_v38 }
  0x2e   :  { %599 = vmatpush3.msra.mxu0 %v285_v38 }
  0x2f   :  { %600 = vmatprep.subr.mxu0 %v284_v39 }
  0x30   :  { %601 = vmatpush3.msra.mxu0 %v284_v39  ;;  %v404_v39 = vsub.s32 4, %v782_v9 }
  0x31   :  { %602 = vmatprep.subr.mxu0 %v283_v40 }
  0x32   :  { %603 = vmatpush3.msra.mxu0 %v283_v40  ;;  %v410_v40 = vsub.s32 5, %v782_v9 }
  0xe2   :  { %v580_v11 = vpop.f32.mrf.mxu0  ;;  %v587_v12 = vpop.f32.mrf.mxu1 }
  0xe3   :  { %v224_v16 = vadd.f32 %v587_v12, %v580_v11 }
  0xe4   :  { %v137_v14 = vpop.f32.mrf.mxu0  ;;  %v218_v15 = vpop.f32.mrf.mxu1 }
  0xe5   :  { %v219_v17 = vadd.f32 %v218_v15, %v137_v14  ;;  %v232_v21 = vadd.f32 %v230_v18, %v224_v16 }
  0xe7   :  { %v231_v19 = vadd.f32 %v230_v18, %v219_v17  ;;  %v237_v22 = vsel %vm233_vm1, %v232_v21, 0.0 }
  0xe9   :  { %v234_v20 = vsel %vm233_vm1, %v231_v19, 0.0 }
  0xea   :  { %235 = vadd.xlane.f32.xlu0 %v234_v20 }
  0xee   :  { %238 = vadd.xlane.f32.xlu0 %v237_v22 }
 0x173   :  { %v236_v23 = vpop.xlane.xlu0 %235 }
 0x174   :  { %v241_v24 = vmul.f32 0.015625, %v236_v23 }
 0x176   :  { %v243_v25 = vsub.f32 %v231_v19, %v241_v24 }
 0x177   :  { %v239_v26 = vpop.xlane.xlu0 %238 }
 0x178   :  { %v242_v27 = vmul.f32 0.015625, %v239_v26  ;;  %v245_v28 = vmul.f32 %v243_v25, %v243_v25  ;;  %v430_v26 = vld [vmem:[%s874_s5 + $0x30] sm:$0xff] }
 0x17a   :  { %v244_v29 = vsub.f32 %v232_v21, %v242_v27  ;;  %v247_v30 = vsel %vm233_vm1, %v245_v28, 0.0  ;;  %v429_v27 = vld [vmem:[%s874_s5 + $0x28] sm:$0xff]  ;;  %v428_v28 = vld [vmem:[%s874_s5 + $0x20] sm:$0xff] }
 0x17b   :  { %248 = vadd.xlane.f32.xlu1 %v247_v30  ;;  %v426_v30 = vld [vmem:[%s874_s5 + $0x10] sm:$0xff] }
 0x17c   :  { %v246_v31 = vmul.f32 %v244_v29, %v244_v29 }
 0x17e   :  { %v250_v32 = vsel %vm233_vm1, %v246_v31, 0.0  ;;  %v425_v31 = vld [vmem:[%s874_s5 + $0x8] sm:$0xff] }
 0x17f   :  { %251 = vadd.xlane.f32.xlu1 %v250_v32  ;;  %v424_v32 = vld [vmem:[%s874_s5] sm:$0xff] }
 0x204   :  { %v249_v41 = vpop.xlane.xlu1 %248 }
 0x205   :  { %v253_v42 = vmul.f32 0.015625, %v249_v41  ;;  %v405_v41 = vrot.slane %v788_v13, %v404_v39 }
 0x207   :  { %v255_v43 = vadd.f32 1e-05, %v253_v42 }
 0x208   :  { %v252_v44 = vpop.xlane.xlu1 %251 }
 0x209   :  { %631 = vrsqrt.f32 %v255_v43  ;;  %v254_v45 = vmul.f32 0.015625, %v252_v44  ;;  %v411_v44 = vrot.slane %v788_v13, %v410_v40 }
 0x20b   :  { %v256_v46 = vadd.f32 1e-05, %v254_v45 }
 0x20d   :  { %633 = vrsqrt.f32 %v256_v46 }
 0x216   :  { %v632_v50 = vpop.eup %631 }
 0x217   :  { %v259_v51 = vmul.f32 %v632_v50, %v243_v25  ;;  %v431_v25 = vld [vmem:[%s874_s5 + $0x38] sm:$0xff] }
 0x218   :  { %607 = vmatprep.subr.mxu1 %v431_v25 }
 0x219   :  { %v265_v53 = vmul.f32 %v264_v49, %v259_v51  ;;  %608 = vmatpush3.msra.mxu1 %v431_v25 }
 0x21a   :  { %v634_v54 = vpop.eup %633  ;;  %609 = vmatprep.subr.mxu1 %v430_v26 }
 0x21b   :  { %v260_v55 = vmul.f32 %v634_v54, %v244_v29  ;;  %v271_v56 = vadd.f32 %v270_v52, %v265_v53  ;;  %610 = vmatpush3.msra.mxu1 %v430_v26  ;;  %v427_v29 = vld [vmem:[%s874_s5 + $0x18] sm:$0xff]  ;;  %s717_s5 = smov [#allocation7]  }
 0x21c   :  { %611 = vmatprep.subr.mxu1 %v429_v27  ;;  %s525_s23 = sshll.u32 %s717_s5, 4  ;;  %s526_s23 = int_to_ptr.vmem [resolvable:$true] %s525_s23 }
 0x21d   :  { %v266_v57 = vmul.f32 %v264_v49, %v260_v55  ;;  %v275_v58 = vmul.f32 0.70710677, %v271_v56  ;;  %v273_v62 = vmul.f32 0.5, %v271_v56  ;;  %612 = vmatpush3.msra.mxu1 %v429_v27  ;;  %s687_s24 = scalar_lea.vmem %s526_s23, 256  ;;  %p692_p11 = scmp.lt.s32.totalorder %s526_s23, %s526_s23 }
 0x21e   :  { %613 = vmatprep.subr.mxu1 %v428_v28  ;;  %p688_p10 = scmp.ne.s32.totalorder %s526_s23, %s687_s24  ;;  %p693_p12 = scmp.lt.s32.totalorder %s687_s24, %s687_s24 }
 0x21f   :  { %v272_v59 = vadd.f32 %v270_v52, %v266_v57  ;;  %635 = verf.f32 %v275_v58  ;;  %614 = vmatpush3.msra.mxu1 %v428_v28 }
 0x220   :  { %615 = vmatprep.subr.mxu1 %v427_v29  ;;  %p694_p13 = por %p693_p12, %p692_p11 }
 0x221   :  { %v276_v60 = vmul.f32 0.70710677, %v272_v59  ;;  %v274_v2 = vmul.f32 0.5, %v272_v59  ;;  %616 = vmatpush3.msra.mxu1 %v427_v29 }
 0x222   :  { %617 = vmatprep.subr.mxu1 %v426_v30  ;;  %p695_p0 = pnand %p694_p13, %p688_p10 }
 0x223   :  { %637 = verf.f32 %v276_v60  ;;  %618 = vmatpush3.msra.mxu1 %v426_v30 }
 0x224   :  { %619 = vmatprep.subr.mxu1 %v425_v31 }
 0x225   :  { %620 = vmatpush3.msra.mxu1 %v425_v31 }
 0x226   :  { %621 = vmatprep.subr.mxu1 %v424_v32 }
 0x227   :  { %622 = vmatpush3.msra.mxu1 %v424_v32 }
 0x22c   :  { %v636_v61 = vpop.eup %635 }
 0x22d   :  { %v279_v63 = vadd.f32 1.0, %v636_v61  ;;  %v434_v61 = vsub.s32 6, %v782_v9 }
 0x22f   :  { %v281_v0 = vmul.f32 %v279_v63, %v273_v62  ;;  %v435_v62 = vrot.slane %v788_v13, %v434_v61 }
 0x230   :  { %v638_v1 = vpop.eup %637 }
 0x231   :  { %604 = vmatprep.mubr.msk.f32.mxu0 %vm233_vm1, %v281_v0  ;;  %v280_v3 = vadd.f32 1.0, %v638_v1 }
 0x233   :  { %v282_v4 = vmul.f32 %v280_v3, %v274_v2 }
 0x235   :  { %605 = vmatmul.mubr.msk.f32.vlgmr.msra.gmra.mxu0 %vm233_vm1, %v282_v4 }
 0x2f5   :  { %v606_v7 = vpop.f32.mrf.mxu0 }
 0x2f6   :  { %v373_v8 = vadd.f32 %v606_v7, %v294_v6 }
 0x2f7   :  { %v367_v10 = vpop.f32.mrf.mxu0 }
 0x2f8   :  { %v368_v11 = vadd.f32 %v367_v10, %v294_v6  ;;  %v379_v12 = vsel %vm233_vm1, %v373_v8, 0.0 }
 0x2f9   :  { %380 = vadd.xlane.f32.xlu1 %v379_v12 }
 0x2fa   :  { %v376_v14 = vsel %vm233_vm1, %v368_v11, 0.0 }
 0x2fb   :  { %377 = vadd.xlane.f32.xlu0 %v376_v14 }
 0x382   :  { %v381_v15 = vpop.xlane.xlu1 %380 }
 0x383   :  { %v383_v16 = vmul.f32 0.015625, %v381_v15 }
 0x384   :  { %v378_v17 = vpop.xlane.xlu0 %377 }
 0x385   :  { %v385_v18 = vsub.f32 %v373_v8, %v383_v16  ;;  %v382_v19 = vmul.f32 0.015625, %v378_v17 }
 0x387   :  { %v384_v20 = vsub.f32 %v368_v11, %v382_v19  ;;  %v387_v21 = vmul.f32 %v385_v18, %v385_v18 }
 0x389   :  { %v391_v22 = vsel %vm233_vm1, %v387_v21, 0.0  ;;  %v386_v23 = vmul.f32 %v384_v20, %v384_v20 }
 0x38a   :  { %392 = vadd.xlane.f32.xlu1 %v391_v22 }
 0x38b   :  { %v388_v24 = vsel %vm233_vm1, %v386_v23, 0.0 }
 0x38c   :  { %389 = vadd.xlane.f32.xlu0 %v388_v24 }
 0x413   :  { %v393_v33 = vpop.xlane.xlu1 %392 }
 0x414   :  { %v395_v34 = vmul.f32 0.015625, %v393_v33 }
 0x415   :  { %v390_v35 = vpop.xlane.xlu0 %389 }
 0x416   :  { %v397_v36 = vadd.f32 1e-05, %v395_v34  ;;  %v394_v37 = vmul.f32 0.015625, %v390_v35 }
 0x418   :  { %639 = vrsqrt.f32 %v397_v36  ;;  %v396_v38 = vadd.f32 1e-05, %v394_v37 }
 0x41a   :  { %641 = vrsqrt.f32 %v396_v38 }
 0x425   :  { %v640_v42 = vpop.eup %639 }
 0x426   :  { %v401_v43 = vmul.f32 %v640_v42, %v385_v18 }
 0x427   :  { %v642_v45 = vpop.eup %641 }
 0x428   :  { %v400_v46 = vmul.f32 %v642_v45, %v384_v20  ;;  %v407_v47 = vmul.f32 %v405_v41, %v401_v43 }
 0x42a   :  { %v406_v48 = vmul.f32 %v405_v41, %v400_v46  ;;  %v413_v49 = vadd.f32 %v411_v44, %v407_v47 }
 0x42c   :  { %v412_v50 = vadd.f32 %v411_v44, %v406_v48  ;;  %v417_v51 = vmul.f32 0.70710677, %v413_v49  ;;  %v415_v58 = vmul.f32 0.5, %v413_v49 }
 0x42e   :  { %v416_v52 = vmul.f32 0.70710677, %v412_v50  ;;  %643 = verf.f32 %v417_v51  ;;  %v414_v56 = vmul.f32 0.5, %v412_v50 }
 0x430   :  { %645 = verf.f32 %v416_v52 }
 0x43b   :  { %v644_v53 = vpop.eup %643 }
 0x43c   :  { %v421_v55 = vadd.f32 1.0, %v644_v53 }
 0x43d   :  { %v646_v54 = vpop.eup %645 }
 0x43e   :  { %v420_v57 = vadd.f32 1.0, %v646_v54  ;;  %v423_v60 = vmul.f32 %v421_v55, %v415_v58 }
 0x440   :  { %v422_v59 = vmul.f32 %v420_v57, %v414_v56 }
 0x442   :  { %623 = vmatprep.mubr.msk.f32.mxu1 %vm233_vm1, %v422_v59 }
 0x443   :  { %624 = vmatmul.mubr.msk.f32.vlgmr.msra.gmra.mxu1 %vm233_vm1, %v423_v60 }
 0x503   :  { %v625_v63 = vpop.f32.mrf.mxu1 }
 0x504   :  { %v514_v0 = vadd.f32 %v625_v63, %v435_v62 }
 0x505   :  { %v508_v1 = vpop.f32.mrf.mxu1 }
 0x506   :  { %v509_v2 = vadd.f32 %v508_v1, %v435_v62  ;;  %519 = vst.msk [vmem:[#allocation7 + $0x8] sm:$0xff] %vm517_vm2, %v514_v0 }
 0x508   :  { %518 = vst.msk [vmem:[#allocation7] sm:$0xff] %vm517_vm2, %v509_v2 }
 0x509   :  { %698 = shalt.err (!%p695_p0)
}
 0x50a   :  { %531 = dma.vmem_to_hbm [thread:$0]  %s526_s23, 256, %s876_s7, [#allocation4], %s714_s27, %s714_s27, %s715_s28  }
 0x50b   :  { %711 = dma.done.wait [#allocation4], 256  }
 0x50c   :  { %712 = vsyncadd [#allocation4], 4294967040 }
 0x50d   :  { %535 = vsyncpa [#allocation3], 1 }
 0x50e   :  { %536 = vsyncpa [#allocation6], 1 }
 0x50f   :  { %537 = vsyncpa [#allocation4], 1 }

</bundles_post_ra>
